<compile_context>
chip_gen: v7x
topology: tpu7x:2x2x1
jax: 0.10.0
libtpu: 0.0.40
codegen_flags: <defaults>
</compile_context>

<pallas_src>
import functools

import jax
import jax.numpy as jnp
from jax.experimental import pallas as pl
from jax.experimental.pallas import tpu as pltpu


def _tmd_conv_kernel(edges_ref,   # SMEM (T,) int32: #edges whose destination has type t
                     mask_ref,    # VMEM (T, TILE_N, 1) f32: per-type destination-row masks
                     a_ref,       # VMEM (TILE_N, N): adjacency row block (dst rows)
                     x_ref,       # VMEM (N, 4F): [ns | nv_x | nv_y | nv_z] feature slab
                     w_ref,       # VMEM (T, 4F, 4F): block-diag(Ws_t, Wv_t, Wv_t, Wv_t)
                     out_ref,     # VMEM (TILE_N, 4F) f32: output slab
                     *, n_types: int):
    # Hoisted aggregation: one lane-dense (TILE_N, N) @ (N, 4F) MXU matmul per row
    # block, shared by all types ((M_t ⊙ A) @ X == M_t ⊙ (A @ X)).
    h = jnp.dot(a_ref[...], x_ref[...], preferred_element_type=jnp.float32)  # (TILE_N, 4F) f32

    out_ref[...] = jnp.zeros_like(out_ref)

    # T is tiny and static -> fully unrolled static loop; w_ref[t] / mask_ref[t] are
    # static (zero-cost) slices.
    for t in range(n_types):
        @pl.when(edges_ref[t] > 0)            # skip zero-edge types entirely
        def _accumulate(t=t):
            # (TILE_N, 1) row mask broadcast along lanes (free VPU splat), kept in f32.
            masked = h * mask_ref[t]
            out_ref[...] += jnp.dot(masked.astype(w_ref.dtype), w_ref[t],
                                    preferred_element_type=jnp.float32)

    # mean over contributing types; guard against "no type has edges".
    n_active = 0.0
    for t in range(n_types):
        n_active = n_active + (edges_ref[t] > 0).astype(jnp.float32)
    inv = jnp.where(n_active > 0, 1.0 / jnp.maximum(n_active, 1.0), 0.0)
    out_ref[...] = out_ref[...] * inv


@functools.partial(jax.jit, static_argnames=("tile_n", "use_bf16"))
def tmd_conv(adj, atomic_number, z_types, ns, nv, ws, wv, *, tile_n=None, use_bf16=False):
    """adj: (N,N) f32 dense adjacency (adj[v,u] = #edges u->v), atomic_number: (N,),
    z_types: (T,), ns: (N,F), nv: (3,N,F), ws/wv: (T,F,F). Returns (vrst (3,N,F), srst (N,F))."""
    N, F = ns.shape
    C = nv.shape[0]
    T = z_types.shape[0]
    FD = (C + 1) * F                       # 4F (= 128 lanes for F = 32)

    if tile_n is None:
        tile_n = min(N, 512)               # keep (TILE_N, N) adjacency blocks VMEM-friendly
    if N % tile_n != 0:
        tile_n = N
    n_blocks = N // tile_n

    dot_dtype = jnp.bfloat16 if use_bf16 else jnp.float32

    # Lane-dense feature slab [ns | nv_x | nv_y | nv_z] -> (N, 4F).
    x = jnp.concatenate([ns] + [nv[c] for c in range(C)], axis=-1)

    # Block-diagonal per-type projection diag(Ws_t, Wv_t, Wv_t, Wv_t) -> (T, 4F, 4F).
    w = jnp.zeros((T, FD, FD), jnp.float32)
    w = w.at[:, :F, :F].set(ws)
    for c in range(C):
        o = (c + 1) * F
        w = w.at[:, o:o + F, o:o + F].set(wv)

    # Per-type destination masks; node axis on sublanes -> (T, N, 1).
    mask = (atomic_number[None, :] == z_types[:, None]).astype(jnp.float32)   # (T, N)
    mask_tn1 = mask[:, :, None]

    # #edges of in_subgraph(g, nodes of type t) = in-degree summed over dst rows of type t.
    edges_per_type = (adj.sum(axis=1)[None, :] * mask).sum(axis=1).astype(jnp.int32)  # (T,)

    kernel = functools.partial(_tmd_conv_kernel, n_types=T)

    grid_spec = pltpu.PrefetchScalarGridSpec(
        num_scalar_prefetch=1,
        grid=(n_blocks,),
        in_specs=[
            pl.BlockSpec((T, tile_n, 1), lambda i, e: (0, i, 0)),   # masks (row block)
            pl.BlockSpec((tile_n, N),    lambda i, e: (i, 0)),      # adjacency row block
            pl.BlockSpec((N, FD),        lambda i, e: (0, 0)),      # feature slab
            pl.BlockSpec((T, FD, FD),    lambda i, e: (0, 0, 0)),   # all per-type weights
        ],
        out_specs=pl.BlockSpec((tile_n, FD), lambda i, e: (i, 0)),
    )

    out = pl.pallas_call(
        kernel,
        out_shape=jax.ShapeDtypeStruct((N, FD), jnp.float32),
        grid_spec=grid_spec,
        compiler_params=pltpu.CompilerParams(
            dimension_semantics=("parallel",),          # row blocks split across TCs on v7x
            vmem_limit_bytes=48 * 1024 * 1024),
    )(edges_per_type, mask_tn1, adj.astype(dot_dtype), x.astype(dot_dtype),
      w.astype(dot_dtype))

    srst = out[:, :F]
    vrst = out[:, F:].reshape(N, C, F).transpose(1, 0, 2)
    return vrst, srst


def reference(adj, atomic_number, z_types, ns, nv, ws, wv):
    vrsts, srsts = [], []
    for t, z in enumerate(z_types):
        m = (atomic_number == z).astype(jnp.float32)
        agg = adj * m[:, None]
        if float(jnp.sum(agg)) == 0.0:     # "if rel_graph.number_of_edges() == 0: continue"
            continue
        srsts.append((agg @ ns) @ ws[t])
        vrsts.append(jnp.einsum("nm,cmf->cnf", agg, nv) @ wv[t])
    return jnp.mean(jnp.stack(vrsts), 0), jnp.mean(jnp.stack(srsts), 0)


if __name__ == "__main__":
    key = jax.random.PRNGKey(0)
    N, F, E = 128, 32, 512
    atomic_numbers = {"H": 1, "C": 6, "O": 8}          # node types handled by the module
    z_types = jnp.array(list(atomic_numbers.values()), dtype=jnp.int32)
    T = z_types.shape[0]

    k_z, k_src, k_dst, k_ns, k_nv, k_ws, k_wv = jax.random.split(key, 7)

    # graph: random atomic numbers + random directed edges -> dense adjacency
    atomic_number = z_types[jax.random.randint(k_z, (N,), 0, T)]
    src = jax.random.randint(k_src, (E,), 0, N)
    dst = jax.random.randint(k_dst, (E,), 0, N)
    adj = jnp.zeros((N, N), jnp.float32).at[dst, src].add(1.0)   # adj[v,u] = #edges u->v

    # node features
    ns = jax.random.normal(k_ns, (N, F), jnp.float32)
    nv = jax.random.normal(k_nv, (3, N, F), jnp.float32)

    # deterministic per-type parameters (one sub-module per node type)
    ws = 0.1 * jax.random.normal(k_ws, (T, F, F), jnp.float32)
    wv = 0.1 * jax.random.normal(k_wv, (T, F, F), jnp.float32)

    v_ref, s_ref = reference(adj, atomic_number, z_types, ns, nv, ws, wv)

    # f32 MXU path (tile_n=64 -> 2 row blocks, exercises the parallel row axis)
    vrst, srst = tmd_conv(adj, atomic_number, z_types, ns, nv, ws, wv, tile_n=64)
    jax.block_until_ready((vrst, srst))
    assert jnp.allclose(vrst, v_ref, atol=1e-3, rtol=1e-3)
    assert jnp.allclose(srst, s_ref, atol=1e-3, rtol=1e-3)

    # bf16 MXU operand path (v6e/v7x lever; edge counts & masks stay exact in bf16)
    vrst_bf, srst_bf = tmd_conv(adj, atomic_number, z_types, ns, nv, ws, wv,
                                tile_n=64, use_bf16=True)
    jax.block_until_ready((vrst_bf, srst_bf))
    assert jnp.allclose(vrst_bf, v_ref, atol=5e-2, rtol=5e-2)
    assert jnp.allclose(srst_bf, s_ref, atol=5e-2, rtol=5e-2)

    print("KERNEL_OK")
</pallas_src>

<mosaic_0001>
module attributes {stable_mosaic.version = 11 : i64} {
  func.func @_tmd_conv_kernel(%arg0: i32, %arg1: memref<3xi32, #tpu.memory_space<smem>>, %arg2: memref<3x64x1xf32, #tpu.memory_space<vmem>>, %arg3: memref<64x128xf32, #tpu.memory_space<vmem>>, %arg4: memref<128x128xf32, #tpu.memory_space<vmem>>, %arg5: memref<3x128x128xf32, #tpu.memory_space<vmem>>, %arg6: memref<64x128xf32, #tpu.memory_space<vmem>>) attributes {dimension_semantics = [#tpu.dimension_semantics<parallel>], iteration_bounds = array<i64: 2>, scalar_prefetch = 1 : i64, scratch_operands = 0 : i64, tpu.core_type = #tpu.core_type<tc>, window_params = [{transform_indices = @transform_0, window_bounds = array<i64: 3, 64, 1>}, {transform_indices = @transform_1, window_bounds = array<i64: 64, 128>}, {pipeline_mode = #tpu.pipeline_mode<synchronous>, transform_indices = @transform_2, window_bounds = array<i64: 128, 128>}, {pipeline_mode = #tpu.pipeline_mode<synchronous>, transform_indices = @transform_3, window_bounds = array<i64: 3, 128, 128>}, {transform_indices = @transform_4, window_bounds = array<i64: 64, 128>}]} {
    %c0 = arith.constant 0 : index
    %c0_0 = arith.constant 0 : index
    %0 = vector.load %arg3[%c0, %c0_0] : memref<64x128xf32, #tpu.memory_space<vmem>>, vector<64x128xf32>
    %c0_1 = arith.constant 0 : index
    %c0_2 = arith.constant 0 : index
    %1 = vector.load %arg4[%c0_1, %c0_2] : memref<128x128xf32, #tpu.memory_space<vmem>>, vector<128x128xf32>
    %cst = arith.constant dense<0.000000e+00> : vector<64x128xf32>
    %2 = tpu.matmul %0, %1, %cst {dimension_numbers = #tpu.dot_dimension_numbers<[1], [0], [0], [1], [0, 0, 1, 1], [], []>} : vector<64x128xf32>, vector<128x128xf32>, vector<64x128xf32> -> vector<64x128xf32>
    %cst_3 = arith.constant 0.000000e+00 : f32
    %3 = vector.broadcast %cst_3 : f32 to vector<64x128xf32>
    %c0_4 = arith.constant 0 : index
    %c0_5 = arith.constant 0 : index
    %4 = vector.load %arg6[%c0_4, %c0_5] : memref<64x128xf32, #tpu.memory_space<vmem>>, vector<64x128xf32>
    tpu.vector_store %arg6[%c0_4, %c0_5], %3 {strides = array<i32>} : memref<64x128xf32, #tpu.memory_space<vmem>>, vector<64x128xf32>,
    %c0_6 = arith.constant 0 : index
    %5 = memref.load %arg1[%c0_6] : memref<3xi32, #tpu.memory_space<smem>>
    %c0_i32 = arith.constant 0 : i32
    %6 = arith.cmpi sgt, %5, %c0_i32 : i32
    %7 = arith.extui %6 : i1 to i32
    %c0_i32_7 = arith.constant 0 : i32
    %8 = arith.cmpi ne, %7, %c0_i32_7 : i32
    scf.if %8 {
      %c0_27 = arith.constant 0 : index
      %c0_28 = arith.constant 0 : index
      %c0_29 = arith.constant 0 : index
      %40 = vector.load %arg2[%c0_27, %c0_28, %c0_29] : memref<3x64x1xf32, #tpu.memory_space<vmem>>, vector<1x64x1xf32>
      %41 = vector.shape_cast %40 : vector<1x64x1xf32> to vector<64x1xf32>
      %42 = vector.broadcast %41 : vector<64x1xf32> to vector<64x128xf32>
      %43 = arith.mulf %2, %42 : vector<64x128xf32>
      %c0_30 = arith.constant 0 : index
      %c0_31 = arith.constant 0 : index
      %44 = vector.load %arg6[%c0_30, %c0_31] : memref<64x128xf32, #tpu.memory_space<vmem>>, vector<64x128xf32>
      %c0_32 = arith.constant 0 : index
      %c0_33 = arith.constant 0 : index
      %c0_34 = arith.constant 0 : index
      %45 = vector.load %arg5[%c0_32, %c0_33, %c0_34] : memref<3x128x128xf32, #tpu.memory_space<vmem>>, vector<1x128x128xf32>
      %46 = vector.shape_cast %45 : vector<1x128x128xf32> to vector<128x128xf32>
      %cst_35 = arith.constant dense<0.000000e+00> : vector<64x128xf32>
      %47 = tpu.matmul %43, %46, %cst_35 {dimension_numbers = #tpu.dot_dimension_numbers<[1], [0], [0], [1], [0, 0, 1, 1], [], []>} : vector<64x128xf32>, vector<128x128xf32>, vector<64x128xf32> -> vector<64x128xf32>
      %48 = arith.addf %44, %47 : vector<64x128xf32>
      %c0_36 = arith.constant 0 : index
      %c0_37 = arith.constant 0 : index
      %49 = vector.load %arg6[%c0_36, %c0_37] : memref<64x128xf32, #tpu.memory_space<vmem>>, vector<64x128xf32>
      tpu.vector_store %arg6[%c0_36, %c0_37], %48 {strides = array<i32>} : memref<64x128xf32, #tpu.memory_space<vmem>>, vector<64x128xf32>,
    } else {
    }
    %c1 = arith.constant 1 : index
    %9 = memref.load %arg1[%c1] : memref<3xi32, #tpu.memory_space<smem>>
    %c0_i32_8 = arith.constant 0 : i32
    %10 = arith.cmpi sgt, %9, %c0_i32_8 : i32
    %11 = arith.extui %10 : i1 to i32
    %c0_i32_9 = arith.constant 0 : i32
    %12 = arith.cmpi ne, %11, %c0_i32_9 : i32
    scf.if %12 {
      %c1_27 = arith.constant 1 : index
      %c0_28 = arith.constant 0 : index
      %c0_29 = arith.constant 0 : index
      %40 = vector.load %arg2[%c1_27, %c0_28, %c0_29] : memref<3x64x1xf32, #tpu.memory_space<vmem>>, vector<1x64x1xf32>
      %41 = vector.shape_cast %40 : vector<1x64x1xf32> to vector<64x1xf32>
      %42 = vector.broadcast %41 : vector<64x1xf32> to vector<64x128xf32>
      %43 = arith.mulf %2, %42 : vector<64x128xf32>
      %c0_30 = arith.constant 0 : index
      %c0_31 = arith.constant 0 : index
      %44 = vector.load %arg6[%c0_30, %c0_31] : memref<64x128xf32, #tpu.memory_space<vmem>>, vector<64x128xf32>
      %c1_32 = arith.constant 1 : index
      %c0_33 = arith.constant 0 : index
      %c0_34 = arith.constant 0 : index
      %45 = vector.load %arg5[%c1_32, %c0_33, %c0_34] : memref<3x128x128xf32, #tpu.memory_space<vmem>>, vector<1x128x128xf32>
      %46 = vector.shape_cast %45 : vector<1x128x128xf32> to vector<128x128xf32>
      %cst_35 = arith.constant dense<0.000000e+00> : vector<64x128xf32>
      %47 = tpu.matmul %43, %46, %cst_35 {dimension_numbers = #tpu.dot_dimension_numbers<[1], [0], [0], [1], [0, 0, 1, 1], [], []>} : vector<64x128xf32>, vector<128x128xf32>, vector<64x128xf32> -> vector<64x128xf32>
      %48 = arith.addf %44, %47 : vector<64x128xf32>
      %c0_36 = arith.constant 0 : index
      %c0_37 = arith.constant 0 : index
      %49 = vector.load %arg6[%c0_36, %c0_37] : memref<64x128xf32, #tpu.memory_space<vmem>>, vector<64x128xf32>
      tpu.vector_store %arg6[%c0_36, %c0_37], %48 {strides = array<i32>} : memref<64x128xf32, #tpu.memory_space<vmem>>, vector<64x128xf32>,
    } else {
    }
    %c2 = arith.constant 2 : index
    %13 = memref.load %arg1[%c2] : memref<3xi32, #tpu.memory_space<smem>>
    %c0_i32_10 = arith.constant 0 : i32
    %14 = arith.cmpi sgt, %13, %c0_i32_10 : i32
    %15 = arith.extui %14 : i1 to i32
    %c0_i32_11 = arith.constant 0 : i32
    %16 = arith.cmpi ne, %15, %c0_i32_11 : i32
    scf.if %16 {
      %c2_27 = arith.constant 2 : index
      %c0_28 = arith.constant 0 : index
      %c0_29 = arith.constant 0 : index
      %40 = vector.load %arg2[%c2_27, %c0_28, %c0_29] : memref<3x64x1xf32, #tpu.memory_space<vmem>>, vector<1x64x1xf32>
      %41 = vector.shape_cast %40 : vector<1x64x1xf32> to vector<64x1xf32>
      %42 = vector.broadcast %41 : vector<64x1xf32> to vector<64x128xf32>
      %43 = arith.mulf %2, %42 : vector<64x128xf32>
      %c0_30 = arith.constant 0 : index
      %c0_31 = arith.constant 0 : index
      %44 = vector.load %arg6[%c0_30, %c0_31] : memref<64x128xf32, #tpu.memory_space<vmem>>, vector<64x128xf32>
      %c2_32 = arith.constant 2 : index
      %c0_33 = arith.constant 0 : index
      %c0_34 = arith.constant 0 : index
      %45 = vector.load %arg5[%c2_32, %c0_33, %c0_34] : memref<3x128x128xf32, #tpu.memory_space<vmem>>, vector<1x128x128xf32>
      %46 = vector.shape_cast %45 : vector<1x128x128xf32> to vector<128x128xf32>
      %cst_35 = arith.constant dense<0.000000e+00> : vector<64x128xf32>
      %47 = tpu.matmul %43, %46, %cst_35 {dimension_numbers = #tpu.dot_dimension_numbers<[1], [0], [0], [1], [0, 0, 1, 1], [], []>} : vector<64x128xf32>, vector<128x128xf32>, vector<64x128xf32> -> vector<64x128xf32>
      %48 = arith.addf %44, %47 : vector<64x128xf32>
      %c0_36 = arith.constant 0 : index
      %c0_37 = arith.constant 0 : index
      %49 = vector.load %arg6[%c0_36, %c0_37] : memref<64x128xf32, #tpu.memory_space<vmem>>, vector<64x128xf32>
      tpu.vector_store %arg6[%c0_36, %c0_37], %48 {strides = array<i32>} : memref<64x128xf32, #tpu.memory_space<vmem>>, vector<64x128xf32>,
    } else {
    }
    %c0_12 = arith.constant 0 : index
    %17 = memref.load %arg1[%c0_12] : memref<3xi32, #tpu.memory_space<smem>>
    %c0_i32_13 = arith.constant 0 : i32
    %18 = arith.cmpi sgt, %17, %c0_i32_13 : i32
    %19 = arith.extui %18 : i1 to i32
    %20 = arith.sitofp %19 : i32 to f32
    %cst_14 = arith.constant 0.000000e+00 : f32
    %21 = arith.addf %cst_14, %20 : f32
    %c1_15 = arith.constant 1 : index
    %22 = memref.load %arg1[%c1_15] : memref<3xi32, #tpu.memory_space<smem>>
    %c0_i32_16 = arith.constant 0 : i32
    %23 = arith.cmpi sgt, %22, %c0_i32_16 : i32
    %24 = arith.extui %23 : i1 to i32
    %25 = arith.sitofp %24 : i32 to f32
    %26 = arith.addf %21, %25 : f32
    %c2_17 = arith.constant 2 : index
    %27 = memref.load %arg1[%c2_17] : memref<3xi32, #tpu.memory_space<smem>>
    %c0_i32_18 = arith.constant 0 : i32
    %28 = arith.cmpi sgt, %27, %c0_i32_18 : i32
    %29 = arith.extui %28 : i1 to i32
    %30 = arith.sitofp %29 : i32 to f32
    %31 = arith.addf %26, %30 : f32
    %cst_19 = arith.constant 0.000000e+00 : f32
    %32 = arith.cmpf ogt, %31, %cst_19 : f32
    %cst_20 = arith.constant 1.000000e+00 : f32
    %33 = arith.maximumf %31, %cst_20 : f32
    %cst_21 = arith.constant 1.000000e+00 : f32
    %34 = arith.divf %cst_21, %33 : f32
    %cst_22 = arith.constant 0.000000e+00 : f32
    %35 = arith.select %32, %34, %cst_22 : f32
    %c0_23 = arith.constant 0 : index
    %c0_24 = arith.constant 0 : index
    %36 = vector.load %arg6[%c0_23, %c0_24] : memref<64x128xf32, #tpu.memory_space<vmem>>, vector<64x128xf32>
    %37 = vector.broadcast %35 : f32 to vector<64x128xf32>
    %38 = arith.mulf %36, %37 : vector<64x128xf32>
    %c0_25 = arith.constant 0 : index
    %c0_26 = arith.constant 0 : index
    %39 = vector.load %arg6[%c0_25, %c0_26] : memref<64x128xf32, #tpu.memory_space<vmem>>, vector<64x128xf32>
    tpu.vector_store %arg6[%c0_25, %c0_26], %38 {strides = array<i32>} : memref<64x128xf32, #tpu.memory_space<vmem>>, vector<64x128xf32>,
    return
  }
  func.func @transform_0(%arg0: i32, %arg1: memref<3xi32, #tpu.memory_space<smem>>) -> (i32, i32, i32) {
    %c0_i32 = arith.constant 0 : i32
    %c0_i32_0 = arith.constant 0 : i32
    %c0_i32_1 = arith.constant 0 : i32
    return %c0_i32, %arg0, %c0_i32_0 : i32, i32, i32
  }
  func.func @transform_1(%arg0: i32, %arg1: memref<3xi32, #tpu.memory_space<smem>>) -> (i32, i32) {
    %c0_i32 = arith.constant 0 : i32
    %c0_i32_0 = arith.constant 0 : i32
    return %arg0, %c0_i32 : i32, i32
  }
  func.func @transform_2(%arg0: i32, %arg1: memref<3xi32, #tpu.memory_space<smem>>) -> (i32, i32) {
    %c0_i32 = arith.constant 0 : i32
    %c0_i32_0 = arith.constant 0 : i32
    %c0_i32_1 = arith.constant 0 : i32
    return %c0_i32, %c0_i32_0 : i32, i32
  }
  func.func @transform_3(%arg0: i32, %arg1: memref<3xi32, #tpu.memory_space<smem>>) -> (i32, i32, i32) {
    %c0_i32 = arith.constant 0 : i32
    %c0_i32_0 = arith.constant 0 : i32
    %c0_i32_1 = arith.constant 0 : i32
    %c0_i32_2 = arith.constant 0 : i32
    return %c0_i32, %c0_i32_0, %c0_i32_1 : i32, i32, i32
  }
  func.func @transform_4(%arg0: i32, %arg1: memref<3xi32, #tpu.memory_space<smem>>) -> (i32, i32) {
    %c0_i32 = arith.constant 0 : i32
    %c0_i32_0 = arith.constant 0 : i32
    return %arg0, %c0_i32 : i32, i32
  }
}

</mosaic_0001>

<bundles_post_ra>
// kernel: tmd_conv.1
= control target key start
LH: loop header
LB: loop body
LE: loop exit
PB: predicated region body
PF: predicated region fallthrough
CT: control target
= control target key end

     0   :  { %s2339_s0 = inlined_call_operand.vmem [shape: s32[3], index: 0, kind: input, shape index: {}]   ;;  %s2340_s1 = inlined_call_operand.vmem [shape: f32[3,128,1], index: 1, kind: input, shape index: {}]   ;;  %s2341_s2 = inlined_call_operand.vmem [shape: f32[128,128], index: 2, kind: input, shape index: {}]   ;;  %s2342_s3 = inlined_call_operand.vmem [shape: f32[128,128], index: 3, kind: input, shape index: {}]   ;;  %s2343_s4 = inlined_call_operand.vmem [shape: f32[3,128,128], index: 4, kind: input, shape index: {}]   ;;  %s2344_s5 = inlined_call_operand.vmem [shape: f32[128,128], index: 5, kind: output, shape index: {}]  }
   0x1   :  { %s10_s20 = sshll.u32 %s2339_s0, 4  ;;  %s11_s20 = int_to_ptr.vmem [resolvable:$true] %s10_s20 }
   0x2   :  { %s1810_s21 = scalar_lea.vmem %s11_s20, 16  ;;  %p1815_p1 = scmp.lt.s32.totalorder %s11_s20, %s11_s20 }
   0x3   :  { %p1811_p0 = scmp.ne.s32.totalorder %s11_s20, %s1810_s21  ;;  %p1816_p2 = scmp.lt.s32.totalorder %s1810_s21, %s1810_s21 }
   0x5   :  { %p1817_p3 = por %p1816_p2, %p1815_p1 }
   0x7   :  { %p1818_p4 = pnand %p1817_p3, %p1811_p0 }
   0x9   :  { %1821 = shalt.err (!%p1818_p4)  }
   0xa   :  { %s1848_s22 = smov [#allocation3]  }
   0xb   :  { %13 = dma.vmem_to_smem %s11_s20, 16, %s1848_s22, [#allocation2] }
   0xc   :  { %1834 = dma.done.wait [#allocation2], 16 }
   0xd   :  { %1835 = vsyncadd [#allocation2], 4294967280 }
   0xe   :  { %15 = sfence }
   0xf   :  { %s1887_s23 = smov 0   ;;  %s1889_s24 = smov 0  }
  0x10   :  { %s1891_s25 = smov 0  }
  0x11 LB: > { %s1235_s0 = sadd.s32 4294967295, %s1846_s25   ;;  %s1904_s26 = sadd.s32 1, %s1846_s25   ;;  %s1846_s25 = sphi %s1891_s25, %s2347_s25   ;;  %s1842_s24 = sphi %s1889_s24, %s2346_s24   ;;  %s1838_s23 = sphi %s1887_s23, %s2345_s23  }
  0x12   : > { %s25_s27 = ssub.s32 %s1846_s25, %s1904_s26  ;;  %s28_s28 = sadd.s32 1, %s1842_s24 }
  0x13   : > { %p26_p5 = scmp.eq.s32.totalorder %s25_s27, 0  ;;  %p35_p6 = scmp.ne.s32.totalorder %s1842_s24, %s1838_s23 }
  0x14   : > { %p36_p7 = scmp.eq.s32.totalorder %s1846_s25, 0  ;;  %p1238_p9 = scmp.ge.s32.totalorder %s1846_s25, 2 }
  0x15   : > { %s1913_s29 = scalar_select %p26_p5, %s1842_s24, %s28_s28  }
  0x16   : > { %p37_p8 = por %p36_p7, %p35_p6  ;;  %161 = sbr.rel (%p1238_p9) target bundleno = 46 (0x2e), region = 24 }
  0x1d   : > { %164 = sbr.rel (!%p37_p8) target bundleno = 46 (0x2e), region = 28  ;;  %s166_s30 = sand.u32 (%p37_p8), 1, %s1842_s24  }
  0x1e   : > { %s1303_s6 = sshll.u32 (%p37_p8), %s1846_s25, 6  ;;  %s1768_s7 = smul.u32 (%p37_p8), 192, %s166_s30 }
  0x1f   : > { %s1921_s10 = scalar_lea.vmem (%p37_p8), %s2340_s1, %s1303_s6 }
  0x20   : > { %v245_v0 = vld [vmem:[%s1921_s10] sm:$0xff] (%p37_p8)  ;;  %v247_v1 = vld [vmem:[%s1921_s10 + $0x8] sm:$0xff] (%p37_p8)  ;;  %v249_v2 = vld [vmem:[%s1921_s10 + $0x10] sm:$0xff] (%p37_p8)  ;;  %s1929_s11 = scalar_lea.vmem (%p37_p8), [#allocation4], %s1768_s7 }
  0x21   : > { %v251_v3 = vld [vmem:[%s1921_s10 + $0x18] sm:$0xff] (%p37_p8)  ;;  %v253_v4 = vld [vmem:[%s1921_s10 + $0x20] sm:$0xff] (%p37_p8)  ;;  %v255_v5 = vld [vmem:[%s1921_s10 + $0x28] sm:$0xff] (%p37_p8)  ;;  %246 = vst [vmem:[%s1929_s11] sm:$0xff] (%p37_p8), %v245_v0 }
  0x22   : > { %248 = vst [vmem:[%s1929_s11 + $0x8] sm:$0xff] (%p37_p8), %v247_v1  ;;  %250 = vst [vmem:[%s1929_s11 + $0x10] sm:$0xff] (%p37_p8), %v249_v2  ;;  %v257_v6 = vld [vmem:[%s1921_s10 + $0x30] sm:$0xff] (%p37_p8)  ;;  %v259_v7 = vld [vmem:[%s1921_s10 + $0x38] sm:$0xff] (%p37_p8) }
  0x23   : > { %252 = vst [vmem:[%s1929_s11 + $0x18] sm:$0xff] (%p37_p8), %v251_v3  ;;  %254 = vst [vmem:[%s1929_s11 + $0x20] sm:$0xff] (%p37_p8), %v253_v4  ;;  %v261_v8 = vld [vmem:[%s1921_s10 + $0x80] sm:$0xff] (%p37_p8)  ;;  %v263_v9 = vld [vmem:[%s1921_s10 + $0x88] sm:$0xff] (%p37_p8) }
  0x24   : > { %256 = vst [vmem:[%s1929_s11 + $0x28] sm:$0xff] %v255_v5  ;;  %258 = vst [vmem:[%s1929_s11 + $0x30] sm:$0xff] %v257_v6  ;;  %v265_v10 = vld [vmem:[%s1921_s10 + $0x90] sm:$0xff]  ;;  %v267_v11 = vld [vmem:[%s1921_s10 + $0x98] sm:$0xff] }
  0x25   : > { %260 = vst [vmem:[%s1929_s11 + $0x38] sm:$0xff] %v259_v7  ;;  %262 = vst [vmem:[%s1929_s11 + $0x40] sm:$0xff] %v261_v8  ;;  %v269_v12 = vld [vmem:[%s1921_s10 + $0xa0] sm:$0xff]  ;;  %v271_v13 = vld [vmem:[%s1921_s10 + $0xa8] sm:$0xff] }
  0x26   : > { %264 = vst [vmem:[%s1929_s11 + $0x48] sm:$0xff] %v263_v9  ;;  %266 = vst [vmem:[%s1929_s11 + $0x50] sm:$0xff] %v265_v10  ;;  %v273_v14 = vld [vmem:[%s1921_s10 + $0xb0] sm:$0xff]  ;;  %v275_v15 = vld [vmem:[%s1921_s10 + $0xb8] sm:$0xff] }
  0x27   : > { %268 = vst [vmem:[%s1929_s11 + $0x58] sm:$0xff] %v267_v11  ;;  %270 = vst [vmem:[%s1929_s11 + $0x60] sm:$0xff] %v269_v12  ;;  %v277_v16 = vld [vmem:[%s1921_s10 + $0x100] sm:$0xff]  ;;  %v279_v17 = vld [vmem:[%s1921_s10 + $0x108] sm:$0xff] }
  0x28   : > { %272 = vst [vmem:[%s1929_s11 + $0x68] sm:$0xff] %v271_v13  ;;  %274 = vst [vmem:[%s1929_s11 + $0x70] sm:$0xff] %v273_v14  ;;  %v281_v18 = vld [vmem:[%s1921_s10 + $0x110] sm:$0xff]  ;;  %v283_v19 = vld [vmem:[%s1921_s10 + $0x118] sm:$0xff] }
  0x29   : > { %276 = vst [vmem:[%s1929_s11 + $0x78] sm:$0xff] %v275_v15  ;;  %278 = vst [vmem:[%s1929_s11 + $0x80] sm:$0xff] %v277_v16  ;;  %v285_v20 = vld [vmem:[%s1921_s10 + $0x120] sm:$0xff]  ;;  %v287_v21 = vld [vmem:[%s1921_s10 + $0x128] sm:$0xff] }
  0x2a   : > { %280 = vst [vmem:[%s1929_s11 + $0x88] sm:$0xff] %v279_v17  ;;  %282 = vst [vmem:[%s1929_s11 + $0x90] sm:$0xff] %v281_v18  ;;  %v289_v22 = vld [vmem:[%s1921_s10 + $0x130] sm:$0xff]  ;;  %v291_v23 = vld [vmem:[%s1921_s10 + $0x138] sm:$0xff] }
  0x2b   : > { %284 = vst [vmem:[%s1929_s11 + $0x98] sm:$0xff] %v283_v19  ;;  %286 = vst [vmem:[%s1929_s11 + $0xa0] sm:$0xff] %v285_v20 }
  0x2c   : > { %288 = vst [vmem:[%s1929_s11 + $0xa8] sm:$0xff] %v287_v21  ;;  %290 = vst [vmem:[%s1929_s11 + $0xb0] sm:$0xff] %v289_v22 }
  0x2d   : > { %292 = vst [vmem:[%s1929_s11 + $0xb8] sm:$0xff] %v291_v23 }
  0x2e PF: > { %p1241_p10 = scmp.ge.s32.totalorder %s1846_s25, 1  ;;  %p306_p11 = scmp.lt.s32.totalorder %s1846_s25, 3 }
  0x30   : > { %p307_p12 = pnand %p1241_p10, %p306_p11 }
  0x31   : > { %s313_s12 = sand.u32 (!%p307_p12), 1, %s1838_s23   ;;  %v364_v24 = vld [vmem:[%s2342_s3] sm:$0xff] (!%p307_p12)  ;;  %v365_v25 = vld [vmem:[%s2342_s3 + $0x8] sm:$0xff] (!%p307_p12)  ;;  %v366_v26 = vld [vmem:[%s2342_s3 + $0x10] sm:$0xff] (!%p307_p12)  ;;  %s1242_s19 = sshll.u32 (!%p307_p12), %s1235_s0, 3  ;;  %v1849_v36 = vmov (!%p307_p12), 0.0  }
  0x32   : > { %310 = sbr.rel (%p307_p12) target bundleno = 1344 (0x540), region = 70  ;;  %v1576_v27 = vpack.c.bf16 (!%p307_p12), %v365_v25, %v364_v24  ;;  %v367_v28 = vld [vmem:[%s2342_s3 + $0x18] sm:$0xff] (!%p307_p12)  ;;  %p345_p13 = scmp.lt.s32.totalorder (!%p307_p12), %s1242_s19, 15  ;;  %v368_v30 = vld [vmem:[%s2342_s3 + $0x20] sm:$0xff] (!%p307_p12)  ;;  %v369_v31 = vld [vmem:[%s2342_s3 + $0x28] sm:$0xff] (!%p307_p12) }
  0x33   : > { %s1987_s20 = smul.u32 (!%p307_p12), 192, %s313_s12  ;;  %v1580_v29 = vpack.c.bf16 (!%p307_p12), %v367_v28, %v366_v26  ;;  %v1584_v32 = vpack.c.bf16 (!%p307_p12), %v369_v31, %v368_v30  ;;  %v370_v33 = vld [vmem:[%s2342_s3 + $0x30] sm:$0xff] (!%p307_p12)  ;;  %v371_v34 = vld [vmem:[%s2342_s3 + $0x38] sm:$0xff] (!%p307_p12)  ;;  %v372_v39 = vld [vmem:[%s2342_s3 + $0x40] sm:$0xff] (!%p307_p12)  ;;  %s493_s9 = sld [smem:[#allocation3]] (!%p307_p12) }
  0x34   : > { %1577 = vmatprep.subr.bf16.mxu0 (!%p307_p12), %v1576_v27  ;;  %1704 = vmatprep.subr.bf16.mxu1 (!%p307_p12), %v1576_v27  ;;  %v1588_v38 = vpack.c.bf16 (!%p307_p12), %v371_v34, %v370_v33  ;;  %v373_v40 = vld [vmem:[%s2342_s3 + $0x48] sm:$0xff] (!%p307_p12)  ;;  %v374_v42 = vld [vmem:[%s2342_s3 + $0x50] sm:$0xff] (!%p307_p12)  ;;  %v375_v43 = vld [vmem:[%s2342_s3 + $0x58] sm:$0xff] (!%p307_p12) }
  0x35   : > { %1579 = vmatpush3.bf16.msra.mxu0 (!%p307_p12), %v1576_v27  ;;  %1712 = vmatpush3.bf16.msra.mxu1 (!%p307_p12), %v1576_v27  ;;  %v1592_v41 = vpack.c.bf16 (!%p307_p12), %v373_v40, %v372_v39  ;;  %v1596_v44 = vpack.c.bf16 (!%p307_p12), %v375_v43, %v374_v42  ;;  %v376_v45 = vld [vmem:[%s2342_s3 + $0x60] sm:$0xff] (!%p307_p12)  ;;  %v377_v46 = vld [vmem:[%s2342_s3 + $0x68] sm:$0xff] (!%p307_p12)  ;;  %v378_v48 = vld [vmem:[%s2342_s3 + $0x70] sm:$0xff] (!%p307_p12)  ;;  %s2071_s10 = scalar_lea.vmem (!%p307_p12), [#allocation4], %s1987_s20 }
  0x36   : > { %1581 = vmatprep.subr.bf16.mxu0 (!%p307_p12), %v1580_v29  ;;  %1705 = vmatprep.subr.bf16.mxu1 (!%p307_p12), %v1580_v29  ;;  %v1600_v47 = vpack.c.bf16 (!%p307_p12), %v377_v46, %v376_v45  ;;  %v379_v49 = vld [vmem:[%s2342_s3 + $0x78] sm:$0xff] (!%p307_p12) }
  0x37   : > { %v1604_v50 = vpack.c.bf16 (!%p307_p12), %v379_v49, %v378_v48 }
  0x39   : > { %s2349_s19 = smov (!%p345_p13, %s1242_s19), 15  ;;  %1583 = vmatpush3.bf16.msra.mxu0 %v1580_v29  ;;  %1713 = vmatpush3.bf16.msra.mxu1 %v1580_v29  ;;  %p1246_p0 = scmp.le.s32.totalorder %s493_s9, 0 }
  0x3a   : > { %s1243_s8 = sshll.u32 %s2349_s19, 3  ;;  %1585 = vmatprep.subr.bf16.mxu0 %v1584_v32  ;;  %1706 = vmatprep.subr.bf16.mxu1 %v1584_v32  ;;  %v499_v1 = vld [vmem:[%s2071_s10 + $0x8] sm:$0xff] (!%p1246_p0)  ;;  %v498_v2 = vld [vmem:[%s2071_s10] sm:$0xff] (!%p1246_p0)  ;;  %v1850_v3 = vmov (!%p1246_p0), 0   ;;  %v564_v8 = vld [vmem:[%s2343_s4 + $0x10] sm:$0xff] (!%p1246_p0) }
  0x3b   : > { %s2007_s11 = scalar_lea.vmem %s2341_s2, %s1243_s8  ;;  %s2012_s14 = scalar_lea.vmem %s2344_s5, %s1243_s8  ;;  %1803 = vset.pattern.permute.xlu1 (!%p1246_p0), %v1850_v3  ;;  %1802 = vset.pattern.permute.xlu0 (!%p1246_p0), %v1850_v3  ;;  %v503_v4 = vld [vmem:[%s2071_s10 + $0x28] sm:$0xff] (!%p1246_p0)  ;;  %v502_v5 = vld [vmem:[%s2071_s10 + $0x20] sm:$0xff] (!%p1246_p0)  ;;  %v565_v9 = vld [vmem:[%s2343_s4 + $0x18] sm:$0xff] (!%p1246_p0) }
  0x3c   : > { %v356_v35 = vld [vmem:[%s2007_s11] sm:$0xff]  ;;  %485 = vst [vmem:[%s2012_s14] sm:$0xff] %v1849_v36  ;;  %486 = vst [vmem:[%s2012_s14 + $0x8] sm:$0xff] %v1849_v36  ;;  %v357_v51 = vld [vmem:[%s2007_s11 + $0x8] sm:$0xff]  ;;  %513 = vperm.xlu1 (!%p1246_p0), %1803, %v499_v1   ;;  %508 = vperm.xlu0 (!%p1246_p0), %1802, %v498_v2   ;;  %v1612_v11 = vpack.c.bf16 (!%p1246_p0), %v565_v9, %v564_v8 }
  0x3d   : > { %487 = vst [vmem:[%s2012_s14 + $0x10] sm:$0xff] %v1849_v36  ;;  %488 = vst [vmem:[%s2012_s14 + $0x18] sm:$0xff] %v1849_v36  ;;  %v360_v37 = vld [vmem:[%s2007_s11 + $0x20] sm:$0xff]  ;;  %1432 = vmatprep.mubr.f32.mxu0 %v356_v35  ;;  %1587 = vmatpush3.bf16.msra.mxu0 %v1584_v32  ;;  %v361_v52 = vld [vmem:[%s2007_s11 + $0x28] sm:$0xff] }
  0x3e   : > { %489 = vst [vmem:[%s2012_s14 + $0x20] sm:$0xff] %v1849_v36  ;;  %490 = vst [vmem:[%s2012_s14 + $0x28] sm:$0xff] %v1849_v36  ;;  %1438 = vmatprep.mubr.f32.mxu1 %v360_v37  ;;  %1714 = vmatpush3.bf16.msra.mxu1 %v1584_v32  ;;  %v358_v53 = vld [vmem:[%s2007_s11 + $0x10] sm:$0xff]  ;;  %v359_v55 = vld [vmem:[%s2007_s11 + $0x18] sm:$0xff] }
  0x3f   : > { %491 = vst [vmem:[%s2012_s14 + $0x30] sm:$0xff] %v1849_v36  ;;  %492 = vst [vmem:[%s2012_s14 + $0x38] sm:$0xff] %v1849_v36  ;;  %1589 = vmatprep.subr.bf16.mxu0 %v1588_v38  ;;  %1707 = vmatprep.subr.bf16.mxu1 %v1588_v38  ;;  %v362_v54 = vld [vmem:[%s2007_s11 + $0x30] sm:$0xff]  ;;  %v363_v56 = vld [vmem:[%s2007_s11 + $0x38] sm:$0xff] }
  0x40   : > { %v562_v6 = vld [vmem:[%s2343_s4] sm:$0xff] (!%p1246_p0)  ;;  %v563_v7 = vld [vmem:[%s2343_s4 + $0x8] sm:$0xff] (!%p1246_p0)  ;;  %533 = vperm.xlu1 (!%p1246_p0), %1803, %v503_v4   ;;  %528 = vperm.xlu0 (!%p1246_p0), %1802, %v502_v5   ;;  %v504_v14 = vld [vmem:[%s2071_s10 + $0x30] sm:$0xff] (!%p1246_p0) }
  0x41   : > { %1591 = vmatpush3.bf16.msra.mxu0 %v1588_v38  ;;  %v1608_v10 = vpack.c.bf16 (!%p1246_p0), %v563_v7, %v562_v6  ;;  %v566_v12 = vld [vmem:[%s2343_s4 + $0x20] sm:$0xff] (!%p1246_p0)  ;;  %v567_v13 = vld [vmem:[%s2343_s4 + $0x28] sm:$0xff] (!%p1246_p0)  ;;  %v500_v15 = vld [vmem:[%s2071_s10 + $0x10] sm:$0xff] (!%p1246_p0) }
  0x42   : > { %1715 = vmatpush3.bf16.msra.mxu1 %v1588_v38  ;;  %1593 = vmatprep.subr.bf16.mxu0 %v1592_v41  ;;  %v1616_v16 = vpack.c.bf16 (!%p1246_p0), %v567_v13, %v566_v12  ;;  %v568_v17 = vld [vmem:[%s2343_s4 + $0x30] sm:$0xff] (!%p1246_p0)  ;;  %v569_v18 = vld [vmem:[%s2343_s4 + $0x38] sm:$0xff] (!%p1246_p0)  ;;  %v570_v22 = vld [vmem:[%s2343_s4 + $0x40] sm:$0xff] (!%p1246_p0) }
  0x43   : > { %1708 = vmatprep.subr.bf16.mxu1 %v1592_v41  ;;  %v505_v19 = vld [vmem:[%s2071_s10 + $0x38] sm:$0xff] (!%p1246_p0)  ;;  %v1620_v21 = vpack.c.bf16 (!%p1246_p0), %v569_v18, %v568_v17  ;;  %v571_v23 = vld [vmem:[%s2343_s4 + $0x48] sm:$0xff] (!%p1246_p0)  ;;  %v572_v25 = vld [vmem:[%s2343_s4 + $0x50] sm:$0xff] (!%p1246_p0) }
  0x44   : > { %538 = vperm.xlu1 (!%p1246_p0), %1803, %v504_v14   ;;  %518 = vperm.xlu0 (!%p1246_p0), %1802, %v500_v15   ;;  %v501_v20 = vld [vmem:[%s2071_s10 + $0x18] sm:$0xff] (!%p1246_p0)  ;;  %v1624_v24 = vpack.c.bf16 (!%p1246_p0), %v571_v23, %v570_v22  ;;  %v574_v28 = vld [vmem:[%s2343_s4 + $0x60] sm:$0xff] (!%p1246_p0)  ;;  %v575_v29 = vld [vmem:[%s2343_s4 + $0x68] sm:$0xff] (!%p1246_p0) }
  0x45   : > { %1595 = vmatpush3.bf16.msra.mxu0 %v1592_v41  ;;  %v573_v26 = vld [vmem:[%s2343_s4 + $0x58] sm:$0xff] (!%p1246_p0)  ;;  %v1632_v30 = vpack.c.bf16 (!%p1246_p0), %v575_v29, %v574_v28  ;;  %v576_v31 = vld [vmem:[%s2343_s4 + $0x70] sm:$0xff] (!%p1246_p0)  ;;  %v558_v1 = vld [vmem:[%s2012_s14 + $0x20] sm:$0xff] (!%p1246_p0) }
  0x46   : > { %1716 = vmatpush3.bf16.msra.mxu1 %v1592_v41  ;;  %1597 = vmatprep.subr.bf16.mxu0 %v1596_v44  ;;  %v1628_v27 = vpack.c.bf16 (!%p1246_p0), %v573_v26, %v572_v25  ;;  %v577_v32 = vld [vmem:[%s2343_s4 + $0x78] sm:$0xff] (!%p1246_p0)  ;;  %v556_v8 = vld [vmem:[%s2012_s14 + $0x10] sm:$0xff] (!%p1246_p0) }
  0x47   : > { %1709 = vmatprep.subr.bf16.mxu1 %v1596_v44  ;;  %v1636_v33 = vpack.c.bf16 (!%p1246_p0), %v577_v32, %v576_v31  ;;  %v557_v6 = vld [vmem:[%s2012_s14 + $0x18] sm:$0xff] (!%p1246_p0)  ;;  %v560_v9 = vld [vmem:[%s2012_s14 + $0x30] sm:$0xff] (!%p1246_p0) }
  0x48   : > { %543 = vperm.xlu1 (!%p1246_p0), %1803, %v505_v19   ;;  %523 = vperm.xlu0 (!%p1246_p0), %1802, %v501_v20   ;;  %v561_v7 = vld [vmem:[%s2012_s14 + $0x38] sm:$0xff] (!%p1246_p0) }
  0x49   : > { %1599 = vmatpush3.bf16.msra.mxu0 %v1596_v44 }
  0x4a   : > { %1717 = vmatpush3.bf16.msra.mxu1 %v1596_v44  ;;  %1601 = vmatprep.subr.bf16.mxu0 %v1600_v47 }
  0x4b   : > { %1710 = vmatprep.subr.bf16.mxu1 %v1600_v47 }
  0x4d   : > { %1603 = vmatpush3.bf16.msra.mxu0 %v1600_v47 }
  0x4e   : > { %1718 = vmatpush3.bf16.msra.mxu1 %v1600_v47  ;;  %1605 = vmatprep.subr.bf16.mxu0 %v1604_v50 }
  0x4f   : > { %1711 = vmatprep.subr.bf16.mxu1 %v1604_v50 }
  0x51   : > { %1607 = vmatpush3.bf16.msra.mxu0 %v1604_v50 }
  0x52   : > { %1719 = vmatpush3.bf16.msra.mxu1 %v1604_v50  ;;  %1609 = vmatprep.subr.bf16.mxu0 (!%p1246_p0), %v1608_v10  ;;  %v555_v50 = vld [vmem:[%s2012_s14 + $0x8] sm:$0xff] (!%p1246_p0) }
  0x53   : > { %1720 = vmatprep.subr.bf16.mxu1 (!%p1246_p0), %v1608_v10 }
  0x54   : > { %1433 = vmatmul.mubr.f32.vlgmr.msra.gmra.mrb[0].mxu0 %v357_v51  ;;  %v554_v51 = vld [vmem:[%s2012_s14] sm:$0xff] (!%p1246_p0) }
  0x55   : > { %1439 = vmatmul.mubr.f32.vlgmr.msra.gmra.mrb[0].mxu1 %v361_v52  ;;  %1435 = vmatprep.mubr.f32.mxu0 %v358_v53 }
  0x56   : > { %1441 = vmatprep.mubr.f32.mxu1 %v362_v54  ;;  %1611 = vmatpush3.bf16.msra.mxu0 (!%p1246_p0), %v1608_v10 }
  0x57   : > { %1728 = vmatpush3.bf16.msra.mxu1 (!%p1246_p0), %v1608_v10  ;;  %1613 = vmatprep.subr.bf16.mxu0 (!%p1246_p0), %v1612_v11 }
  0x58   : > { %1436 = vmatmul.mubr.f32.gmra.mrb[2].mxu0 %v359_v55  ;;  %1721 = vmatprep.subr.bf16.mxu1 (!%p1246_p0), %v1612_v11 }
  0x59   : > { %1442 = vmatmul.mubr.f32.gmra.mrb[2].mxu1 %v363_v56  ;;  %v559_v56 = vld [vmem:[%s2012_s14 + $0x28] sm:$0xff] (!%p1246_p0) }
  0x5a   : > { %1615 = vmatpush3.bf16.msra.mxu0 (!%p1246_p0), %v1612_v11 }
  0x5b   : > { %1729 = vmatpush3.bf16.msra.mxu1 (!%p1246_p0), %v1612_v11  ;;  %1617 = vmatprep.subr.bf16.mxu0 (!%p1246_p0), %v1616_v16 }
  0x5c   : > { %1722 = vmatprep.subr.bf16.mxu1 (!%p1246_p0), %v1616_v16 }
  0x5e   : > { %1619 = vmatpush3.bf16.msra.mxu0 (!%p1246_p0), %v1616_v16 }
  0x5f   : > { %1730 = vmatpush3.bf16.msra.mxu1 (!%p1246_p0), %v1616_v16  ;;  %1621 = vmatprep.subr.bf16.mxu0 (!%p1246_p0), %v1620_v21 }
  0x60   : > { %1723 = vmatprep.subr.bf16.mxu1 (!%p1246_p0), %v1620_v21 }
  0x62   : > { %1623 = vmatpush3.bf16.msra.mxu0 (!%p1246_p0), %v1620_v21 }
  0x63   : > { %1731 = vmatpush3.bf16.msra.mxu1 (!%p1246_p0), %v1620_v21  ;;  %1625 = vmatprep.subr.bf16.mxu0 (!%p1246_p0), %v1624_v24 }
  0x64   : > { %1724 = vmatprep.subr.bf16.mxu1 (!%p1246_p0), %v1624_v24 }
  0x66   : > { %1627 = vmatpush3.bf16.msra.mxu0 (!%p1246_p0), %v1624_v24 }
  0x67   : > { %1732 = vmatpush3.bf16.msra.mxu1 (!%p1246_p0), %v1624_v24  ;;  %1629 = vmatprep.subr.bf16.mxu0 (!%p1246_p0), %v1628_v27 }
  0x68   : > { %1725 = vmatprep.subr.bf16.mxu1 (!%p1246_p0), %v1628_v27 }
  0x6a   : > { %1631 = vmatpush3.bf16.msra.mxu0 (!%p1246_p0), %v1628_v27 }
  0x6b   : > { %1733 = vmatpush3.bf16.msra.mxu1 (!%p1246_p0), %v1628_v27  ;;  %1633 = vmatprep.subr.bf16.mxu0 (!%p1246_p0), %v1632_v30 }
  0x6c   : > { %1726 = vmatprep.subr.bf16.mxu1 (!%p1246_p0), %v1632_v30 }
  0x6e   : > { %1635 = vmatpush3.bf16.msra.mxu0 (!%p1246_p0), %v1632_v30 }
  0x6f   : > { %1734 = vmatpush3.bf16.msra.mxu1 (!%p1246_p0), %v1632_v30  ;;  %1637 = vmatprep.subr.bf16.mxu0 (!%p1246_p0), %v1636_v33 }
  0x70   : > { %1727 = vmatprep.subr.bf16.mxu1 (!%p1246_p0), %v1636_v33 }
  0x72   : > { %1639 = vmatpush3.bf16.msra.mxu0 (!%p1246_p0), %v1636_v33 }
  0x73   : > { %1735 = vmatpush3.bf16.msra.mxu1 (!%p1246_p0), %v1636_v33 }
  0xbb   : > { %v514_v34 = vpop.permute.xlu1 (!%p1246_p0), %513  ;;  %v509_v35 = vpop.permute.xlu0 (!%p1246_p0), %508 }
  0xbf   : > { %v534_v38 = vpop.permute.xlu1 (!%p1246_p0), %533  ;;  %v529_v39 = vpop.permute.xlu0 (!%p1246_p0), %528 }
  0xc3   : > { %v539_v42 = vpop.permute.xlu1 (!%p1246_p0), %538  ;;  %v519_v43 = vpop.permute.xlu0 (!%p1246_p0), %518 }
  0xc7   : > { %v544_v46 = vpop.permute.xlu1 (!%p1246_p0), %543  ;;  %v524_v47 = vpop.permute.xlu0 (!%p1246_p0), %523 }
 0x127   : > { %v2054_v57 = vpop.f32.mrb[0].mxu0  ;;  %497 = sbr.rel (%p1246_p0) target bundleno = 521 (0x209), region = 78 }
 0x128   : > { %v2056_v58 = vpop.f32.mrb[0].mxu1  ;;  %v2058_v59 = vpop.f32.mrb[1].mxu0  ;;  %v547_v36 = vmul.f32 (!%p1246_p0), %v2054_v57, %v514_v34 }
 0x129   : > { %v2060_v60 = vpop.f32.mrb[1].mxu1  ;;  %v546_v37 = vmul.f32 (!%p1246_p0), %v509_v35, %v2058_v59  ;;  %v551_v40 = vmul.f32 (!%p1246_p0), %v2056_v58, %v534_v38 }
 0x12a   : > { %v550_v41 = vmul.f32 (!%p1246_p0), %v529_v39, %v2060_v60 }
 0x12b   : > { %v2062_v61 = vpop.f32.mrb[2].mxu0  ;;  %1476 = vmatprep.mubr.f32.mxu0 (!%p1246_p0), %v546_v37 }
 0x12c   : > { %v2064_v62 = vpop.f32.mrb[2].mxu1  ;;  %v2066_v63 = vpop.f32.mrb[3].mxu0  ;;  %1477 = vmatmul.mubr.f32.vlgmr.msra.gmra.mrb[0].mxu0 (!%p1246_p0), %v547_v36  ;;  %1482 = vmatprep.mubr.f32.mxu1 (!%p1246_p0), %v550_v41  ;;  %v549_v49 = vmul.f32 (!%p1246_p0), %v2062_v61, %v524_v47 }
 0x12d   : > { %v2068_v0 = vpop.f32.mrb[3].mxu1  ;;  %1483 = vmatmul.mubr.f32.vlgmr.msra.gmra.mrb[0].mxu1 (!%p1246_p0), %v551_v40  ;;  %v548_v45 = vmul.f32 (!%p1246_p0), %v519_v43, %v2066_v63  ;;  %v553_v48 = vmul.f32 (!%p1246_p0), %v2064_v62, %v544_v46 }
 0x12e   : > { %v552_v44 = vmul.f32 %v539_v42, %v2068_v0 }
 0x12f   : > { %1479 = vmatprep.mubr.f32.mxu0 %v548_v45 }
 0x130   : > { %1485 = vmatprep.mubr.f32.mxu1 %v552_v44  ;;  %1480 = vmatmul.mubr.f32.gmra.mrb[2].mxu0 %v549_v49 }
 0x131   : > { %1486 = vmatmul.mubr.f32.gmra.mrb[2].mxu1 %v553_v48 }
 0x1ff   : > { %v1478_v52 = vpop.f32.mrb[0].mxu0 }
 0x200   : > { %v684_v53 = vadd.f32 %v1478_v52, %v555_v50  ;;  %v644_v54 = vpop.f32.mrb[1].mxu0  ;;  %v1484_v2 = vpop.f32.mrb[0].mxu1 }
 0x201   : > { %v683_v55 = vadd.f32 %v644_v54, %v554_v51  ;;  %v688_v3 = vadd.f32 %v1484_v2, %v559_v56  ;;  %v664_v4 = vpop.f32.mrb[1].mxu1 }
 0x202   : > { %692 = vst [vmem:[%s2012_s14 + $0x8] sm:$0xff] %v684_v53  ;;  %v687_v5 = vadd.f32 %v664_v4, %v558_v1 }
 0x203   : > { %691 = vst [vmem:[%s2012_s14] sm:$0xff] %v683_v55  ;;  %696 = vst [vmem:[%s2012_s14 + $0x28] sm:$0xff] %v688_v3  ;;  %v1481_v10 = vpop.f32.mrb[2].mxu0 }
 0x204   : > { %695 = vst [vmem:[%s2012_s14 + $0x20] sm:$0xff] %v687_v5  ;;  %v1487_v11 = vpop.f32.mrb[2].mxu1  ;;  %v686_v12 = vadd.f32 %v1481_v10, %v557_v6  ;;  %v654_v14 = vpop.f32.mrb[3].mxu0 }
 0x205   : > { %v690_v13 = vadd.f32 %v1487_v11, %v561_v7  ;;  %v674_v15 = vpop.f32.mrb[3].mxu1  ;;  %v685_v16 = vadd.f32 %v654_v14, %v556_v8 }
 0x206   : > { %v689_v17 = vadd.f32 %v674_v15, %v560_v9  ;;  %694 = vst [vmem:[%s2012_s14 + $0x18] sm:$0xff] %v686_v12 }
 0x207   : > { %698 = vst [vmem:[%s2012_s14 + $0x38] sm:$0xff] %v690_v13  ;;  %693 = vst [vmem:[%s2012_s14 + $0x10] sm:$0xff] %v685_v16 }
 0x208   : > { %697 = vst [vmem:[%s2012_s14 + $0x30] sm:$0xff] %v689_v17 }
 0x209 PF: > { %s1247_s23 = sld [smem:[#allocation3 + $0x1]] }
 0x20f   : > { %p1248_p1 = scmp.le.s32.totalorder %s1247_s23, 0 }
 0x210   : > { %v1250_v18 = vld [vmem:[%s2071_s10 + $0x48] sm:$0xff] (!%p1248_p1)  ;;  %v1249_v19 = vld [vmem:[%s2071_s10 + $0x40] sm:$0xff] (!%p1248_p1)  ;;  %v1851_v20 = vmov (!%p1248_p1), 0   ;;  %v1259_v25 = vld [vmem:[%s2343_s4 + $0x90] sm:$0xff] (!%p1248_p1) }
 0x211   : > { %703 = sbr.rel (%p1248_p1) target bundleno = 888 (0x378), region = 82  ;;  %1805 = vset.pattern.permute.xlu1 (!%p1248_p1), %v1851_v20  ;;  %1804 = vset.pattern.permute.xlu0 (!%p1248_p1), %v1851_v20  ;;  %v1254_v21 = vld [vmem:[%s2071_s10 + $0x68] sm:$0xff] (!%p1248_p1)  ;;  %v1253_v22 = vld [vmem:[%s2071_s10 + $0x60] sm:$0xff] (!%p1248_p1)  ;;  %v1260_v26 = vld [vmem:[%s2343_s4 + $0x98] sm:$0xff] (!%p1248_p1) }
 0x212   : > { %720 = vperm.xlu1 (!%p1248_p1), %1805, %v1250_v18   ;;  %715 = vperm.xlu0 (!%p1248_p1), %1804, %v1249_v19   ;;  %v1257_v23 = vld [vmem:[%s2343_s4 + $0x80] sm:$0xff] (!%p1248_p1)  ;;  %v1258_v24 = vld [vmem:[%s2343_s4 + $0x88] sm:$0xff] (!%p1248_p1)  ;;  %v1644_v28 = vpack.c.bf16 (!%p1248_p1), %v1260_v26, %v1259_v25  ;;  %v1255_v31 = vld [vmem:[%s2071_s10 + $0x70] sm:$0xff] (!%p1248_p1) }
 0x213   : > { %v1640_v27 = vpack.c.bf16 (!%p1248_p1), %v1258_v24, %v1257_v23  ;;  %v1261_v29 = vld [vmem:[%s2343_s4 + $0xa0] sm:$0xff] (!%p1248_p1)  ;;  %v1262_v30 = vld [vmem:[%s2343_s4 + $0xa8] sm:$0xff] (!%p1248_p1)  ;;  %v1251_v32 = vld [vmem:[%s2071_s10 + $0x50] sm:$0xff] (!%p1248_p1) }
 0x214   : > { %v1648_v33 = vpack.c.bf16 (!%p1248_p1), %v1262_v30, %v1261_v29  ;;  %v1263_v34 = vld [vmem:[%s2343_s4 + $0xb0] sm:$0xff] (!%p1248_p1)  ;;  %v1264_v35 = vld [vmem:[%s2343_s4 + $0xb8] sm:$0xff] (!%p1248_p1)  ;;  %v1265_v39 = vld [vmem:[%s2343_s4 + $0xc0] sm:$0xff] (!%p1248_p1) }
 0x215   : > { %1641 = vmatprep.subr.bf16.mxu0 (!%p1248_p1), %v1640_v27  ;;  %1736 = vmatprep.subr.bf16.mxu1 (!%p1248_p1), %v1640_v27  ;;  %v1256_v36 = vld [vmem:[%s2071_s10 + $0x78] sm:$0xff] (!%p1248_p1)  ;;  %v1652_v38 = vpack.c.bf16 (!%p1248_p1), %v1264_v35, %v1263_v34  ;;  %v1266_v40 = vld [vmem:[%s2343_s4 + $0xc8] sm:$0xff] (!%p1248_p1)  ;;  %v1267_v42 = vld [vmem:[%s2343_s4 + $0xd0] sm:$0xff] (!%p1248_p1) }
 0x216   : > { %740 = vperm.xlu1 (!%p1248_p1), %1805, %v1254_v21   ;;  %735 = vperm.xlu0 (!%p1248_p1), %1804, %v1253_v22   ;;  %v1252_v37 = vld [vmem:[%s2071_s10 + $0x58] sm:$0xff] (!%p1248_p1)  ;;  %v1656_v41 = vpack.c.bf16 (!%p1248_p1), %v1266_v40, %v1265_v39  ;;  %v1269_v45 = vld [vmem:[%s2343_s4 + $0xe0] sm:$0xff] (!%p1248_p1)  ;;  %v1270_v46 = vld [vmem:[%s2343_s4 + $0xe8] sm:$0xff] (!%p1248_p1) }
 0x217   : > { %1643 = vmatpush3.bf16.msra.mxu0 (!%p1248_p1), %v1640_v27  ;;  %1744 = vmatpush3.bf16.msra.mxu1 (!%p1248_p1), %v1640_v27  ;;  %v1268_v43 = vld [vmem:[%s2343_s4 + $0xd8] sm:$0xff] (!%p1248_p1)  ;;  %v1664_v47 = vpack.c.bf16 (!%p1248_p1), %v1270_v46, %v1269_v45  ;;  %v1271_v48 = vld [vmem:[%s2343_s4 + $0xf0] sm:$0xff] (!%p1248_p1)  ;;  %v762_v11 = vld [vmem:[%s2012_s14 + $0x8] sm:$0xff] (!%p1248_p1) }
 0x218   : > { %1645 = vmatprep.subr.bf16.mxu0 %v1644_v28  ;;  %1737 = vmatprep.subr.bf16.mxu1 %v1644_v28  ;;  %v1660_v44 = vpack.c.bf16 %v1268_v43, %v1267_v42  ;;  %v1272_v49 = vld [vmem:[%s2343_s4 + $0xf8] sm:$0xff]  ;;  %v761_v12 = vld [vmem:[%s2012_s14] sm:$0xff]  ;;  %v766_v17 = vld [vmem:[%s2012_s14 + $0x28] sm:$0xff] }
 0x219   : > { %v1668_v50 = vpack.c.bf16 %v1272_v49, %v1271_v48  ;;  %v765_v18 = vld [vmem:[%s2012_s14 + $0x20] sm:$0xff]  ;;  %v764_v23 = vld [vmem:[%s2012_s14 + $0x18] sm:$0xff]  ;;  %v763_v25 = vld [vmem:[%s2012_s14 + $0x10] sm:$0xff] }
 0x21a   : > { %745 = vperm.xlu1 %1805, %v1255_v31   ;;  %725 = vperm.xlu0 %1804, %v1251_v32   ;;  %v768_v24 = vld [vmem:[%s2012_s14 + $0x38] sm:$0xff]  ;;  %v767_v26 = vld [vmem:[%s2012_s14 + $0x30] sm:$0xff] }
 0x21b   : > { %1647 = vmatpush3.bf16.msra.mxu0 %v1644_v28  ;;  %1745 = vmatpush3.bf16.msra.mxu1 %v1644_v28 }
 0x21c   : > { %1649 = vmatprep.subr.bf16.mxu0 %v1648_v33  ;;  %1738 = vmatprep.subr.bf16.mxu1 %v1648_v33 }
 0x21e   : > { %750 = vperm.xlu1 %1805, %v1256_v36   ;;  %730 = vperm.xlu0 %1804, %v1252_v37  }
 0x21f   : > { %1651 = vmatpush3.bf16.msra.mxu0 %v1648_v33  ;;  %1746 = vmatpush3.bf16.msra.mxu1 %v1648_v33 }
 0x220   : > { %1653 = vmatprep.subr.bf16.mxu0 %v1652_v38  ;;  %1739 = vmatprep.subr.bf16.mxu1 %v1652_v38 }
 0x223   : > { %1655 = vmatpush3.bf16.msra.mxu0 %v1652_v38  ;;  %1747 = vmatpush3.bf16.msra.mxu1 %v1652_v38 }
 0x224   : > { %1657 = vmatprep.subr.bf16.mxu0 %v1656_v41  ;;  %1740 = vmatprep.subr.bf16.mxu1 %v1656_v41 }
 0x227   : > { %1659 = vmatpush3.bf16.msra.mxu0 %v1656_v41  ;;  %1748 = vmatpush3.bf16.msra.mxu1 %v1656_v41 }
 0x228   : > { %1661 = vmatprep.subr.bf16.mxu0 %v1660_v44  ;;  %1741 = vmatprep.subr.bf16.mxu1 %v1660_v44 }
 0x22b   : > { %1663 = vmatpush3.bf16.msra.mxu0 %v1660_v44  ;;  %1749 = vmatpush3.bf16.msra.mxu1 %v1660_v44 }
 0x22c   : > { %1665 = vmatprep.subr.bf16.mxu0 %v1664_v47  ;;  %1742 = vmatprep.subr.bf16.mxu1 %v1664_v47 }
 0x22f   : > { %1667 = vmatpush3.bf16.msra.mxu0 %v1664_v47  ;;  %1750 = vmatpush3.bf16.msra.mxu1 %v1664_v47 }
 0x230   : > { %1669 = vmatprep.subr.bf16.mxu0 %v1668_v50  ;;  %1743 = vmatprep.subr.bf16.mxu1 %v1668_v50 }
 0x233   : > { %1671 = vmatpush3.bf16.msra.mxu0 %v1668_v50  ;;  %1751 = vmatpush3.bf16.msra.mxu1 %v1668_v50 }
 0x291   : > { %v721_v51 = vpop.permute.xlu1 %720  ;;  %v716_v52 = vpop.permute.xlu0 %715 }
 0x292   : > { %v754_v53 = vmul.f32 %v2054_v57, %v721_v51  ;;  %v753_v54 = vmul.f32 %v716_v52, %v2058_v59 }
 0x294   : > { %1520 = vmatprep.mubr.f32.mxu0 %v753_v54 }
 0x295   : > { %v741_v55 = vpop.permute.xlu1 %740  ;;  %1521 = vmatmul.mubr.f32.vlgmr.msra.gmra.mrb[0].mxu0 %v754_v53  ;;  %v736_v56 = vpop.permute.xlu0 %735 }
 0x296   : > { %v758_v1 = vmul.f32 %v2056_v58, %v741_v55  ;;  %v757_v2 = vmul.f32 %v736_v56, %v2060_v60 }
 0x298   : > { %1526 = vmatprep.mubr.f32.mxu1 %v757_v2 }
 0x299   : > { %v746_v3 = vpop.permute.xlu1 %745  ;;  %1527 = vmatmul.mubr.f32.vlgmr.msra.gmra.mrb[0].mxu1 %v758_v1  ;;  %v726_v4 = vpop.permute.xlu0 %725 }
 0x29a   : > { %v759_v5 = vmul.f32 %v746_v3, %v2068_v0  ;;  %v755_v6 = vmul.f32 %v726_v4, %v2066_v63 }
 0x29c   : > { %1523 = vmatprep.mubr.f32.mxu0 %v755_v6  ;;  %1529 = vmatprep.mubr.f32.mxu1 %v759_v5 }
 0x29d   : > { %v751_v7 = vpop.permute.xlu1 %750  ;;  %v731_v8 = vpop.permute.xlu0 %730 }
 0x29e   : > { %v760_v9 = vmul.f32 %v2064_v62, %v751_v7  ;;  %v756_v10 = vmul.f32 %v2062_v61, %v731_v8 }
 0x2a0   : > { %1524 = vmatmul.mubr.f32.gmra.mrb[2].mxu0 %v756_v10  ;;  %1530 = vmatmul.mubr.f32.gmra.mrb[2].mxu1 %v760_v9 }
 0x368   : > { %v1522_v13 = vpop.f32.mrb[0].mxu0 }
 0x369   : > { %v892_v14 = vadd.f32 %v1522_v13, %v762_v11  ;;  %v852_v15 = vpop.f32.mrb[1].mxu0 }
 0x36a   : > { %v891_v16 = vadd.f32 %v852_v15, %v761_v12 }
 0x36b   : > { %900 = vst [vmem:[%s2012_s14 + $0x8] sm:$0xff] %v892_v14 }
 0x36c   : > { %899 = vst [vmem:[%s2012_s14] sm:$0xff] %v891_v16  ;;  %v1528_v19 = vpop.f32.mrb[0].mxu1 }
 0x36d   : > { %v896_v20 = vadd.f32 %v1528_v19, %v766_v17  ;;  %v872_v21 = vpop.f32.mrb[1].mxu1 }
 0x36e   : > { %v895_v22 = vadd.f32 %v872_v21, %v765_v18 }
 0x36f   : > { %904 = vst [vmem:[%s2012_s14 + $0x28] sm:$0xff] %v896_v20 }
 0x370   : > { %903 = vst [vmem:[%s2012_s14 + $0x20] sm:$0xff] %v895_v22 }
 0x373   : > { %v1525_v27 = vpop.f32.mrb[2].mxu0  ;;  %v1531_v28 = vpop.f32.mrb[2].mxu1 }
 0x374   : > { %v894_v29 = vadd.f32 %v1525_v27, %v764_v23  ;;  %v898_v30 = vadd.f32 %v1531_v28, %v768_v24  ;;  %v862_v31 = vpop.f32.mrb[3].mxu0  ;;  %v882_v32 = vpop.f32.mrb[3].mxu1 }
 0x375   : > { %v893_v33 = vadd.f32 %v862_v31, %v763_v25  ;;  %v897_v34 = vadd.f32 %v882_v32, %v767_v26 }
 0x376   : > { %902 = vst [vmem:[%s2012_s14 + $0x18] sm:$0xff] %v894_v29  ;;  %906 = vst [vmem:[%s2012_s14 + $0x38] sm:$0xff] %v898_v30 }
 0x377   : > { %901 = vst [vmem:[%s2012_s14 + $0x10] sm:$0xff] %v893_v33  ;;  %905 = vst [vmem:[%s2012_s14 + $0x30] sm:$0xff] %v897_v34 }
 0x378 PF: > { %s1273_s12 = sld [smem:[#allocation3 + $0x2]] }
 0x37e   : > { %p1274_p2 = scmp.le.s32.totalorder %s1273_s12, 0 }
 0x37f   : > { %v1276_v35 = vld [vmem:[%s2071_s10 + $0x88] sm:$0xff] (!%p1274_p2)  ;;  %v1275_v36 = vld [vmem:[%s2071_s10 + $0x80] sm:$0xff] (!%p1274_p2)  ;;  %v1852_v37 = vmov (!%p1274_p2), 0   ;;  %v1285_v42 = vld [vmem:[%s2343_s4 + $0x110] sm:$0xff] (!%p1274_p2) }
 0x380   : > { %911 = sbr.rel (%p1274_p2) target bundleno = 1255 (0x4e7), region = 86  ;;  %1807 = vset.pattern.permute.xlu1 (!%p1274_p2), %v1852_v37  ;;  %1806 = vset.pattern.permute.xlu0 (!%p1274_p2), %v1852_v37  ;;  %v1280_v38 = vld [vmem:[%s2071_s10 + $0xa8] sm:$0xff] (!%p1274_p2)  ;;  %v1279_v39 = vld [vmem:[%s2071_s10 + $0xa0] sm:$0xff] (!%p1274_p2)  ;;  %v1286_v43 = vld [vmem:[%s2343_s4 + $0x118] sm:$0xff] (!%p1274_p2) }
 0x381   : > { %928 = vperm.xlu1 (!%p1274_p2), %1807, %v1276_v35   ;;  %923 = vperm.xlu0 (!%p1274_p2), %1806, %v1275_v36   ;;  %v1283_v40 = vld [vmem:[%s2343_s4 + $0x100] sm:$0xff] (!%p1274_p2)  ;;  %v1284_v41 = vld [vmem:[%s2343_s4 + $0x108] sm:$0xff] (!%p1274_p2)  ;;  %v1676_v45 = vpack.c.bf16 (!%p1274_p2), %v1286_v43, %v1285_v42  ;;  %v1281_v48 = vld [vmem:[%s2071_s10 + $0xb0] sm:$0xff] (!%p1274_p2) }
 0x382   : > { %v1672_v44 = vpack.c.bf16 (!%p1274_p2), %v1284_v41, %v1283_v40  ;;  %v1287_v46 = vld [vmem:[%s2343_s4 + $0x120] sm:$0xff] (!%p1274_p2)  ;;  %v1288_v47 = vld [vmem:[%s2343_s4 + $0x128] sm:$0xff] (!%p1274_p2)  ;;  %v1277_v49 = vld [vmem:[%s2071_s10 + $0x90] sm:$0xff] (!%p1274_p2) }
 0x383   : > { %v1680_v50 = vpack.c.bf16 (!%p1274_p2), %v1288_v47, %v1287_v46  ;;  %v1289_v51 = vld [vmem:[%s2343_s4 + $0x130] sm:$0xff] (!%p1274_p2)  ;;  %v1290_v52 = vld [vmem:[%s2343_s4 + $0x138] sm:$0xff] (!%p1274_p2)  ;;  %v1291_v56 = vld [vmem:[%s2343_s4 + $0x140] sm:$0xff] (!%p1274_p2) }
 0x384   : > { %1673 = vmatprep.subr.bf16.mxu0 (!%p1274_p2), %v1672_v44  ;;  %1752 = vmatprep.subr.bf16.mxu1 (!%p1274_p2), %v1672_v44  ;;  %v1282_v53 = vld [vmem:[%s2071_s10 + $0xb8] sm:$0xff] (!%p1274_p2)  ;;  %v1684_v55 = vpack.c.bf16 (!%p1274_p2), %v1290_v52, %v1289_v51  ;;  %v1292_v1 = vld [vmem:[%s2343_s4 + $0x148] sm:$0xff] (!%p1274_p2)  ;;  %v1293_v3 = vld [vmem:[%s2343_s4 + $0x150] sm:$0xff] (!%p1274_p2) }
 0x385   : > { %948 = vperm.xlu1 (!%p1274_p2), %1807, %v1280_v38   ;;  %943 = vperm.xlu0 (!%p1274_p2), %1806, %v1279_v39   ;;  %v1278_v54 = vld [vmem:[%s2071_s10 + $0x98] sm:$0xff] (!%p1274_p2)  ;;  %v1688_v2 = vpack.c.bf16 (!%p1274_p2), %v1292_v1, %v1291_v56  ;;  %v1295_v6 = vld [vmem:[%s2343_s4 + $0x160] sm:$0xff] (!%p1274_p2)  ;;  %v1296_v7 = vld [vmem:[%s2343_s4 + $0x168] sm:$0xff] (!%p1274_p2) }
 0x386   : > { %1675 = vmatpush3.bf16.msra.mxu0 (!%p1274_p2), %v1672_v44  ;;  %1760 = vmatpush3.bf16.msra.mxu1 (!%p1274_p2), %v1672_v44  ;;  %v1294_v4 = vld [vmem:[%s2343_s4 + $0x158] sm:$0xff] (!%p1274_p2)  ;;  %v1696_v8 = vpack.c.bf16 (!%p1274_p2), %v1296_v7, %v1295_v6  ;;  %v1297_v9 = vld [vmem:[%s2343_s4 + $0x170] sm:$0xff] (!%p1274_p2)  ;;  %v970_v24 = vld [vmem:[%s2012_s14 + $0x8] sm:$0xff] (!%p1274_p2) }
 0x387   : > { %1677 = vmatprep.subr.bf16.mxu0 %v1676_v45  ;;  %1753 = vmatprep.subr.bf16.mxu1 %v1676_v45  ;;  %v1692_v5 = vpack.c.bf16 %v1294_v4, %v1293_v3  ;;  %v1298_v10 = vld [vmem:[%s2343_s4 + $0x178] sm:$0xff]  ;;  %v974_v28 = vld [vmem:[%s2012_s14 + $0x28] sm:$0xff]  ;;  %v973_v29 = vld [vmem:[%s2012_s14 + $0x20] sm:$0xff] }
 0x388   : > { %v1700_v11 = vpack.c.bf16 %v1298_v10, %v1297_v9  ;;  %v972_v32 = vld [vmem:[%s2012_s14 + $0x18] sm:$0xff]  ;;  %v971_v34 = vld [vmem:[%s2012_s14 + $0x10] sm:$0xff] }
 0x389   : > { %953 = vperm.xlu1 %1807, %v1281_v48   ;;  %933 = vperm.xlu0 %1806, %v1277_v49   ;;  %v976_v33 = vld [vmem:[%s2012_s14 + $0x38] sm:$0xff]  ;;  %v975_v35 = vld [vmem:[%s2012_s14 + $0x30] sm:$0xff] }
 0x38a   : > { %1679 = vmatpush3.bf16.msra.mxu0 %v1676_v45  ;;  %1761 = vmatpush3.bf16.msra.mxu1 %v1676_v45 }
 0x38b   : > { %1681 = vmatprep.subr.bf16.mxu0 %v1680_v50  ;;  %1754 = vmatprep.subr.bf16.mxu1 %v1680_v50 }
 0x38d   : > { %958 = vperm.xlu1 %1807, %v1282_v53   ;;  %938 = vperm.xlu0 %1806, %v1278_v54  }
 0x38e   : > { %1683 = vmatpush3.bf16.msra.mxu0 %v1680_v50  ;;  %1762 = vmatpush3.bf16.msra.mxu1 %v1680_v50 }
 0x38f   : > { %1685 = vmatprep.subr.bf16.mxu0 %v1684_v55  ;;  %1755 = vmatprep.subr.bf16.mxu1 %v1684_v55 }
 0x392   : > { %1687 = vmatpush3.bf16.msra.mxu0 %v1684_v55  ;;  %1763 = vmatpush3.bf16.msra.mxu1 %v1684_v55 }
 0x393   : > { %1689 = vmatprep.subr.bf16.mxu0 %v1688_v2  ;;  %1756 = vmatprep.subr.bf16.mxu1 %v1688_v2 }
 0x396   : > { %1691 = vmatpush3.bf16.msra.mxu0 %v1688_v2  ;;  %1764 = vmatpush3.bf16.msra.mxu1 %v1688_v2 }
 0x397   : > { %1693 = vmatprep.subr.bf16.mxu0 %v1692_v5  ;;  %1757 = vmatprep.subr.bf16.mxu1 %v1692_v5 }
 0x39a   : > { %1695 = vmatpush3.bf16.msra.mxu0 %v1692_v5  ;;  %1765 = vmatpush3.bf16.msra.mxu1 %v1692_v5 }
 0x39b   : > { %1697 = vmatprep.subr.bf16.mxu0 %v1696_v8  ;;  %1758 = vmatprep.subr.bf16.mxu1 %v1696_v8 }
 0x39e   : > { %1699 = vmatpush3.bf16.msra.mxu0 %v1696_v8  ;;  %1766 = vmatpush3.bf16.msra.mxu1 %v1696_v8 }
 0x39f   : > { %1701 = vmatprep.subr.bf16.mxu0 %v1700_v11  ;;  %1759 = vmatprep.subr.bf16.mxu1 %v1700_v11 }
 0x3a2   : > { %1703 = vmatpush3.bf16.msra.mxu0 %v1700_v11  ;;  %1767 = vmatpush3.bf16.msra.mxu1 %v1700_v11 }
 0x400   : > { %v929_v12 = vpop.permute.xlu1 %928  ;;  %v924_v13 = vpop.permute.xlu0 %923 }
 0x401   : > { %v962_v14 = vmul.f32 %v2054_v57, %v929_v12  ;;  %v961_v15 = vmul.f32 %v924_v13, %v2058_v59 }
 0x403   : > { %1564 = vmatprep.mubr.f32.mxu0 %v961_v15 }
 0x404   : > { %v949_v16 = vpop.permute.xlu1 %948  ;;  %1565 = vmatmul.mubr.f32.vlgmr.msra.gmra.mrb[0].mxu0 %v962_v14  ;;  %v944_v17 = vpop.permute.xlu0 %943 }
 0x405   : > { %v966_v18 = vmul.f32 %v2056_v58, %v949_v16  ;;  %v965_v19 = vmul.f32 %v944_v17, %v2060_v60 }
 0x407   : > { %1570 = vmatprep.mubr.f32.mxu1 %v965_v19 }
 0x408   : > { %v954_v20 = vpop.permute.xlu1 %953  ;;  %1571 = vmatmul.mubr.f32.vlgmr.msra.gmra.mrb[0].mxu1 %v966_v18  ;;  %v934_v21 = vpop.permute.xlu0 %933 }
 0x409   : > { %v967_v22 = vmul.f32 %v954_v20, %v2068_v0  ;;  %v963_v57 = vmul.f32 %v934_v21, %v2066_v63  ;;  %v969_v0 = vld [vmem:[%s2012_s14] sm:$0xff] }
 0x40b   : > { %1567 = vmatprep.mubr.f32.mxu0 %v963_v57  ;;  %1573 = vmatprep.mubr.f32.mxu1 %v967_v22 }
 0x40c   : > { %v959_v59 = vpop.permute.xlu1 %958  ;;  %v939_v58 = vpop.permute.xlu0 %938 }
 0x40d   : > { %v968_v23 = vmul.f32 %v2064_v62, %v959_v59  ;;  %v964_v60 = vmul.f32 %v2062_v61, %v939_v58 }
 0x40f   : > { %1568 = vmatmul.mubr.f32.gmra.mrb[2].mxu0 %v964_v60  ;;  %1574 = vmatmul.mubr.f32.gmra.mrb[2].mxu1 %v968_v23 }
 0x4d7   : > { %v1566_v63 = vpop.f32.mrb[0].mxu0 }
 0x4d8   : > { %v1100_v25 = vadd.f32 %v1566_v63, %v970_v24  ;;  %v1060_v26 = vpop.f32.mrb[1].mxu0 }
 0x4d9   : > { %v1099_v27 = vadd.f32 %v1060_v26, %v969_v0 }
 0x4da   : > { %1108 = vst [vmem:[%s2012_s14 + $0x8] sm:$0xff] %v1100_v25 }
 0x4db   : > { %1107 = vst [vmem:[%s2012_s14] sm:$0xff] %v1099_v27  ;;  %v1572_v62 = vpop.f32.mrb[0].mxu1 }
 0x4dc   : > { %v1104_v61 = vadd.f32 %v1572_v62, %v974_v28  ;;  %v1080_v30 = vpop.f32.mrb[1].mxu1 }
 0x4dd   : > { %v1103_v31 = vadd.f32 %v1080_v30, %v973_v29 }
 0x4de   : > { %1112 = vst [vmem:[%s2012_s14 + $0x28] sm:$0xff] %v1104_v61 }
 0x4df   : > { %1111 = vst [vmem:[%s2012_s14 + $0x20] sm:$0xff] %v1103_v31 }
 0x4e2   : > { %v1569_v36 = vpop.f32.mrb[2].mxu0  ;;  %v1575_v37 = vpop.f32.mrb[2].mxu1 }
 0x4e3   : > { %v1102_v38 = vadd.f32 %v1569_v36, %v972_v32  ;;  %v1106_v39 = vadd.f32 %v1575_v37, %v976_v33  ;;  %v1070_v40 = vpop.f32.mrb[3].mxu0  ;;  %v1090_v41 = vpop.f32.mrb[3].mxu1 }
 0x4e4   : > { %v1101_v42 = vadd.f32 %v1070_v40, %v971_v34  ;;  %v1105_v43 = vadd.f32 %v1090_v41, %v975_v35 }
 0x4e5   : > { %1110 = vst [vmem:[%s2012_s14 + $0x18] sm:$0xff] %v1102_v38  ;;  %1114 = vst [vmem:[%s2012_s14 + $0x38] sm:$0xff] %v1106_v39 }
 0x4e6   : > { %1109 = vst [vmem:[%s2012_s14 + $0x10] sm:$0xff] %v1101_v42  ;;  %1113 = vst [vmem:[%s2012_s14 + $0x30] sm:$0xff] %v1105_v43 }
 0x4e7 PF: > { %s1115_s28 = sld [smem:[#allocation3]]  ;;  %s1299_s30 = sld [smem:[#allocation3 + $0x1]]  ;;  %v1136_v46 = vld [vmem:[%s2012_s14] sm:$0xff]  ;;  %v1137_v47 = vld [vmem:[%s2012_s14 + $0x8] sm:$0xff] }
 0x4e8   : > { %s1300_s25 = sld [smem:[#allocation3 + $0x2]]  ;;  %s1853_s12 = smov 1.0   ;;  %v1140_v50 = vld [vmem:[%s2012_s14 + $0x20] sm:$0xff]  ;;  %v1141_v51 = vld [vmem:[%s2012_s14 + $0x28] sm:$0xff] }
 0x4ec   : > { %v1139_v49 = vld [vmem:[%s2012_s14 + $0x18] sm:$0xff] }
 0x4ed   : > { %p1116_p3 = scmp.gt.s32.totalorder %s1115_s28, 0  ;;  %p1121_p4 = scmp.gt.s32.totalorder %s1299_s30, 0  ;;  %v1138_v48 = vld [vmem:[%s2012_s14 + $0x10] sm:$0xff]  ;;  %v1143_v53 = vld [vmem:[%s2012_s14 + $0x38] sm:$0xff] }
 0x4ee   : > { %p1126_p5 = scmp.gt.s32.totalorder %s1300_s25, 0  ;;  %v1142_v52 = vld [vmem:[%s2012_s14 + $0x30] sm:$0xff] }
 0x4ef   : > { %s1117_s0 = scalar_select %p1116_p3, 1, 0 }
 0x4f0   : > { %s1122_s6 = scalar_select %p1121_p4, 1, 0 }
 0x4f1   : > { %s1118_s7 = scvt.s32.f32 %s1117_s0 }
 0x4f2   : > { %s1123_s8 = scvt.s32.f32 %s1122_s6 }
 0x4f3   : > { %s1127_s9 = scalar_select %p1126_p5, 1, 0 }
 0x4f4   : > { %s1124_s11 = sadd.f32 %s1123_s8, %s1118_s7 }
 0x4f5   : > { %s1128_s20 = scvt.s32.f32 %s1127_s9 }
 0x4f7   : > { %s1129_s10 = sadd.f32 %s1128_s20, %s1124_s11 }
 0x4f9   : > { %s1131_s13 = smax.f32 %s1853_s12, %s1129_s10  ;;  %p1130_p6 = scmp.gt.f32.partialorder %s1129_s10, 0.0 }
 0x4fa   : > { %v1132_v44 = vstv %s1131_s13 }
 0x4fb   : > { %1808 = vrcp.f32 %v1132_v44 }
 0x505   : > { %v1809_v45 = vpop.eup %1808 }
 0x506   : > { %1770 = vpush %v1809_v45 }
 0x537   : > { %s1771_s15 = spop %1770 }
 0x538   : > { %s2351_s15 = smov (!%p1130_p6, %s1771_s15), 0.0 }
 0x539   : > { %v1144_v54 = vstv %s2351_s15 }
 0x53a   : > { %v1145_v55 = vmul.f32 %v1144_v54, %v1136_v46  ;;  %v1146_v56 = vmul.f32 %v1144_v54, %v1137_v47  ;;  %v1147_v1 = vmul.f32 %v1144_v54, %v1138_v48  ;;  %v1148_v2 = vmul.f32 %v1144_v54, %v1139_v49 }
 0x53b   : > { %v1149_v3 = vmul.f32 %v1144_v54, %v1140_v50  ;;  %v1150_v4 = vmul.f32 %v1144_v54, %v1141_v51  ;;  %v1151_v5 = vmul.f32 %v1144_v54, %v1142_v52  ;;  %v1152_v6 = vmul.f32 %v1144_v54, %v1143_v53 }
 0x53c   : > { %1153 = vst [vmem:[%s2012_s14] sm:$0xff] %v1145_v55  ;;  %1154 = vst [vmem:[%s2012_s14 + $0x8] sm:$0xff] %v1146_v56 }
 0x53d   : > { %1155 = vst [vmem:[%s2012_s14 + $0x10] sm:$0xff] %v1147_v1  ;;  %1156 = vst [vmem:[%s2012_s14 + $0x18] sm:$0xff] %v1148_v2 }
 0x53e   : > { %1157 = vst [vmem:[%s2012_s14 + $0x20] sm:$0xff] %v1149_v3  ;;  %1158 = vst [vmem:[%s2012_s14 + $0x28] sm:$0xff] %v1150_v4 }
 0x53f   : > { %1159 = vst [vmem:[%s2012_s14 + $0x30] sm:$0xff] %v1151_v5  ;;  %1160 = vst [vmem:[%s2012_s14 + $0x38] sm:$0xff] %v1152_v6 }
 0x540 PF: > { %p18_p7 = scmp.ge.s32.totalorder %s1904_s26, 4   ;;  %s2345_s23 = smov %s1842_s24 }
 0x541   : > { %s2346_s24 = smov %s1913_s29  ;;  %s2347_s25 = smov %s1904_s26 }
 0x542   :  { %20 = sbr.rel (!%p18_p7) target bundleno = 17 (0x11), region = 128 }

</bundles_post_ra>
